<compile_context>
chip_gen: v7x
topology: tpu7x:2x2x1
jax: 0.10.0
libtpu: 0.0.40
codegen_flags: <defaults>
</compile_context>

<pallas_src>
import jax
import jax.numpy as jnp
from jax.experimental import pallas as pl
from jax.experimental.pallas import tpu as pltpu

# ---- model hyperparameters (small, consistent with the module) --------------
D1, D2, C = 8, 8, 4
DIN = D1 + D2                  # x is [B, d1+d2]; x[:, -1] == column DIN-1
HIDDEN = (32, 32)              # hidden = [32, 32] -> one Linear(32,32)+ReLU
H0, H1 = HIDDEN
B = 16                         # batch
LANES = 128                    # lane-dense padding width
HPAD = 128                     # padded contraction dim for the two big matmuls

# dtype for the two 128x128 matmul weight tiles (wh, wf).  bf16 halves the
# dominant slab bytes and uses the native bf16 MXU path on v6e/v7x; set to
# jnp.float32 for a full-precision variant.  Activations/biases stay f32.
MM_WEIGHT_DTYPE = jnp.bfloat16

# ---- f32 slab layout (8-aligned row offsets), [40, 128] f32 = 20 KiB --------
OFF_WC = 0          # W_comb [DIN, H0]  rows 0..15, cols :H0
OFF_B2 = 16         # b2     [1, H0]
OFF_BH = 24         # bh     [1, H1]
OFF_BF = 32         # bf     [1, C]
ROWS_F32 = 40

# ---- matmul-weight slab layout, [256, 128] bf16 = 64 KiB --------------------
OFF_WH = 0          # wh zero-padded to [HPAD, LANES]
OFF_WF = HPAD       # wf zero-padded to [HPAD, LANES]
ROWS_MM = 2 * HPAD


def net_kernel(x_ref, wf32_ref, wmm_ref, o_ref):
    x = x_ref[...]                                        # [B, DIN] f32

    wc = wf32_ref[OFF_WC:OFF_WC + DIN, :]                 # [DIN, 128] f32
    b2 = wf32_ref[OFF_B2:OFF_B2 + 1, :]                   # [1, 128]
    bh = wf32_ref[OFF_BH:OFF_BH + 1, :]                   # [1, 128]
    bf = wf32_ref[OFF_BF:OFF_BF + 1, :]                   # [1, 128]
    wh = wmm_ref[OFF_WH:OFF_WH + HPAD, :]                 # [128, 128] bf16
    wf = wmm_ref[OFF_WF:OFF_WF + HPAD, :]                 # [128, 128] bf16

    # relu(x @ W_comb + b2)  ==  relu(x1 + x2) of the original forward
    h = jnp.maximum(
        jnp.dot(x, wc, preferred_element_type=jnp.float32) + b2, 0.0)
    # hidden: Linear(H0, H1) + ReLU (zero-padded rows/lanes stay exactly zero)
    h = jnp.maximum(
        jnp.dot(h.astype(wh.dtype), wh,
                preferred_element_type=jnp.float32) + bh, 0.0)
    # final: Linear(H1, C); lane-dense [B, 128] store, cols C.. are zero
    o_ref[...] = jnp.dot(h.astype(wf.dtype), wf,
                         preferred_element_type=jnp.float32) + bf


def pack_params(params):
    """One-time parameter fusion + packing (hoisted out of the forward path).

    Fuses input1_sub / input1 / input2 / concat into a single weight:
        x1 + x2 == x @ W_comb + b2   with
        W_comb[:D1, :]    = w1s @ w1[:D1-1, :]
        W_comb[D1:DIN, :] = w2
        W_comb[DIN-1, :] += w1[D1-1, :]     (x[:, -1] is the shared last col)
    Returns (slab_f32, slab_mm); slab pad regions are exactly zero (required
    for padded lanes/rows to stay zero through bias/ReLU).
    """
    w1s, w1, w2, b2, wh, bh, wf, bf = params

    w_comb = jnp.zeros((DIN, H0), jnp.float32)
    w_comb = w_comb.at[:D1, :].set(w1s @ w1[:D1 - 1, :])
    w_comb = w_comb.at[D1:DIN, :].set(w2)
    w_comb = w_comb.at[DIN - 1, :].add(w1[D1 - 1, :])

    slab_f32 = jnp.zeros((ROWS_F32, LANES), jnp.float32)
    slab_f32 = slab_f32.at[OFF_WC:OFF_WC + DIN, :H0].set(w_comb)
    slab_f32 = slab_f32.at[OFF_B2, :H0].set(b2[0])
    slab_f32 = slab_f32.at[OFF_BH, :H1].set(bh[0])
    slab_f32 = slab_f32.at[OFF_BF, :C].set(bf[0])

    slab_mm = jnp.zeros((ROWS_MM, LANES), MM_WEIGHT_DTYPE)
    slab_mm = slab_mm.at[OFF_WH:OFF_WH + H0, :H1].set(wh.astype(MM_WEIGHT_DTYPE))
    slab_mm = slab_mm.at[OFF_WF:OFF_WF + H1, :C].set(wf.astype(MM_WEIGHT_DTYPE))
    return slab_f32, slab_mm


def net_forward(x, slab_f32, slab_mm):
    """Forward pass.  Returns the LANE-DENSE [B, 128] output; columns C..127
    are exactly zero.  Consumers slice [:, :C] (the slice fuses downstream)."""
    bs = x.shape[0]
    bytes_accessed = (x.size * 4
                      + slab_f32.size * 4
                      + slab_mm.size * slab_mm.dtype.itemsize
                      + bs * LANES * 4)
    return pl.pallas_call(
        net_kernel,
        out_shape=jax.ShapeDtypeStruct((bs, LANES), jnp.float32),
        in_specs=[
            pl.BlockSpec(memory_space=pltpu.MemorySpace.VMEM),   # x
            pl.BlockSpec(memory_space=pltpu.MemorySpace.VMEM),   # f32 slab
            pl.BlockSpec(memory_space=pltpu.MemorySpace.VMEM),   # mm-weight slab
        ],
        out_specs=pl.BlockSpec(memory_space=pltpu.MemorySpace.VMEM),
        cost_estimate=pl.CostEstimate(
            flops=2 * bs * (DIN * LANES + 2 * HPAD * LANES),
            transcendentals=0,
            bytes_accessed=bytes_accessed),
    )(x, slab_f32, slab_mm)


def init_linear(key, fan_in, fan_out, bias):
    """Deterministic PyTorch-style Linear init; returns W as [in, out]."""
    kw, kb = jax.random.split(key)
    bound = 1.0 / jnp.sqrt(jnp.float32(fan_in))
    w = jax.random.uniform(kw, (fan_out, fan_in), jnp.float32, -bound, bound)
    b = (jax.random.uniform(kb, (1, fan_out), jnp.float32, -bound, bound)
         if bias else None)
    return w.T, b


def make_params(key):
    k = jax.random.split(key, 5)
    w1s, _ = init_linear(k[0], D1, D1 - 1, bias=False)   # input1_sub
    w1, _ = init_linear(k[1], D1, H0, bias=False)        # input1
    w2, b2 = init_linear(k[2], D2, H0, bias=True)        # input2
    wh, bh = init_linear(k[3], H0, H1, bias=True)        # hidden Linear
    wf, bf = init_linear(k[4], H1, C, bias=True)         # final
    return (w1s, w1, w2, b2, wh, bh, wf, bf)


def reference(x, params, weight_dtype=jnp.float32):
    """Pure-JAX reference of the Defense branch of Net.forward.

    weight_dtype lets us mirror the kernel's bf16 storage of the hidden/final
    weight tiles for a tight numerical comparison."""
    w1s, w1, w2, b2, wh, bh, wf, bf = params
    x1 = x[:, :D1] @ w1s
    x1 = jnp.concatenate([x1, x[:, -1:]], axis=1) @ w1
    x2 = x[:, D1:D1 + D2] @ w2 + b2
    h = jnp.maximum(x1 + x2, 0.0)
    h = jnp.maximum(
        jnp.dot(h.astype(weight_dtype), wh.astype(weight_dtype),
                preferred_element_type=jnp.float32) + bh, 0.0)
    return jnp.dot(h.astype(weight_dtype), wf.astype(weight_dtype),
                   preferred_element_type=jnp.float32) + bf


if __name__ == "__main__":
    key = jax.random.PRNGKey(0)
    kx, kp = jax.random.split(key)
    x = jax.random.normal(kx, (B, DIN), jnp.float32)
    params = make_params(kp)

    # One-time packing, hoisted out of the forward path (perf review item #1).
    slab_f32, slab_mm = pack_params(params)
    jax.block_until_ready((slab_f32, slab_mm))

    fwd = jax.jit(net_forward)
    out_pad = fwd(x, slab_f32, slab_mm)
    jax.block_until_ready(out_pad)
    assert out_pad.shape == (B, LANES) and out_pad.dtype == jnp.float32

    # Consumer-side slice (done once here, outside the hot path).
    out = out_pad[:, :C]

    # Padded lanes must be exactly zero (zero-padded slab regions).
    assert bool(jnp.all(out_pad[:, C:] == 0.0))

    # Tight check against a reference that mirrors the bf16 weight storage.
    ref_q = reference(x, params, weight_dtype=MM_WEIGHT_DTYPE)
    assert jnp.allclose(out, ref_q, atol=2e-3, rtol=2e-3), \
        float(jnp.max(jnp.abs(out - ref_q)))

    # Sanity check against the full-f32 reference (bounded by bf16 weight
    # quantization of the two 32x32 layers).
    ref_f = reference(x, params, weight_dtype=jnp.float32)
    assert jnp.allclose(out, ref_f, atol=5e-2, rtol=5e-2), \
        float(jnp.max(jnp.abs(out - ref_f)))

    print("KERNEL_OK")
</pallas_src>

<mosaic_0001>
module attributes {stable_mosaic.version = 11 : i64} {
  func.func @net_kernel(%arg0: memref<16x16xf32, #tpu.memory_space<vmem>>, %arg1: memref<40x128xf32, #tpu.memory_space<vmem>>, %arg2: memref<256x128xbf16, #tpu.memory_space<vmem>>, %arg3: memref<16x128xf32, #tpu.memory_space<vmem>>) attributes {dimension_semantics = [], scalar_prefetch = 0 : i64, scratch_operands = 0 : i64, tpu.core_type = #tpu.core_type<tc>} {
    %c0 = arith.constant 0 : index
    %c0_0 = arith.constant 0 : index
    %0 = vector.load %arg0[%c0, %c0_0] : memref<16x16xf32, #tpu.memory_space<vmem>>, vector<16x16xf32>
    %c0_1 = arith.constant 0 : index
    %c0_2 = arith.constant 0 : index
    %1 = vector.load %arg1[%c0_1, %c0_2] : memref<40x128xf32, #tpu.memory_space<vmem>>, vector<16x128xf32>
    %c16 = arith.constant 16 : index
    %c0_3 = arith.constant 0 : index
    %2 = vector.load %arg1[%c16, %c0_3] : memref<40x128xf32, #tpu.memory_space<vmem>>, vector<1x128xf32>
    %c24 = arith.constant 24 : index
    %c0_4 = arith.constant 0 : index
    %3 = vector.load %arg1[%c24, %c0_4] : memref<40x128xf32, #tpu.memory_space<vmem>>, vector<1x128xf32>
    %c32 = arith.constant 32 : index
    %c0_5 = arith.constant 0 : index
    %4 = vector.load %arg1[%c32, %c0_5] : memref<40x128xf32, #tpu.memory_space<vmem>>, vector<1x128xf32>
    %c0_6 = arith.constant 0 : index
    %c0_7 = arith.constant 0 : index
    %5 = vector.load %arg2[%c0_6, %c0_7] : memref<256x128xbf16, #tpu.memory_space<vmem>>, vector<128x128xbf16>
    %c128 = arith.constant 128 : index
    %c0_8 = arith.constant 0 : index
    %6 = vector.load %arg2[%c128, %c0_8] : memref<256x128xbf16, #tpu.memory_space<vmem>>, vector<128x128xbf16>
    %cst = arith.constant dense<0.000000e+00> : vector<16x128xf32>
    %7 = tpu.matmul %0, %1, %cst {dimension_numbers = #tpu.dot_dimension_numbers<[1], [0], [0], [1], [0, 0, 1, 1], [], []>} : vector<16x16xf32>, vector<16x128xf32>, vector<16x128xf32> -> vector<16x128xf32>
    %8 = vector.broadcast %2 : vector<1x128xf32> to vector<16x128xf32>
    %9 = arith.addf %7, %8 : vector<16x128xf32>
    %cst_9 = arith.constant 0.000000e+00 : f32
    %10 = vector.broadcast %cst_9 : f32 to vector<16x128xf32>
    %11 = arith.maximumf %9, %10 : vector<16x128xf32>
    %12 = arith.truncf %11 : vector<16x128xf32> to vector<16x128xbf16>
    %cst_10 = arith.constant dense<0.000000e+00> : vector<16x128xf32>
    %13 = tpu.matmul %12, %5, %cst_10 {dimension_numbers = #tpu.dot_dimension_numbers<[1], [0], [0], [1], [0, 0, 1, 1], [], []>} : vector<16x128xbf16>, vector<128x128xbf16>, vector<16x128xf32> -> vector<16x128xf32>
    %14 = vector.broadcast %3 : vector<1x128xf32> to vector<16x128xf32>
    %15 = arith.addf %13, %14 : vector<16x128xf32>
    %cst_11 = arith.constant 0.000000e+00 : f32
    %16 = vector.broadcast %cst_11 : f32 to vector<16x128xf32>
    %17 = arith.maximumf %15, %16 : vector<16x128xf32>
    %18 = arith.truncf %17 : vector<16x128xf32> to vector<16x128xbf16>
    %cst_12 = arith.constant dense<0.000000e+00> : vector<16x128xf32>
    %19 = tpu.matmul %18, %6, %cst_12 {dimension_numbers = #tpu.dot_dimension_numbers<[1], [0], [0], [1], [0, 0, 1, 1], [], []>} : vector<16x128xbf16>, vector<128x128xbf16>, vector<16x128xf32> -> vector<16x128xf32>
    %20 = vector.broadcast %4 : vector<1x128xf32> to vector<16x128xf32>
    %21 = arith.addf %19, %20 : vector<16x128xf32>
    %c0_13 = arith.constant 0 : index
    %c0_14 = arith.constant 0 : index
    %22 = vector.load %arg3[%c0_13, %c0_14] : memref<16x128xf32, #tpu.memory_space<vmem>>, vector<16x128xf32>
    tpu.vector_store %arg3[%c0_13, %c0_14], %21 {strides = array<i32>} : memref<16x128xf32, #tpu.memory_space<vmem>>, vector<16x128xf32>,
    return
  }
}

</mosaic_0001>

<bundles_post_ra>
// kernel: net_forward.1
= control target key start
LH: loop header
LB: loop body
LE: loop exit
PB: predicated region body
PF: predicated region fallthrough
CT: control target
= control target key end

     0   :  { %8 = vsyncpa [#allocation3], 0  ;;  %s720_s0 = inlined_call_operand.hbm [shape: f32[16,16], index: 0, kind: input, shape index: {}]   ;;  %s721_s1 = inlined_call_operand.hbm [shape: f32[40,128], index: 1, kind: input, shape index: {}]   ;;  %s722_s2 = inlined_call_operand.hbm [shape: bf16[256,128], index: 2, kind: input, shape index: {}]   ;;  %s723_s3 = inlined_call_operand.hbm [shape: f32[16,128], index: 3, kind: output, shape index: {}]  }
   0x1   :  { %9 = vsyncpa [#allocation6], 0 }
   0x2   :  { %10 = vsyncpa [#allocation4], 0  ;;  %s608_s12 = smov [#allocation5]   ;;  %s609_s14 = smov [#allocation2]  }
   0x3   :  { %s28_s13 = sshll.u32 %s608_s12, 4  ;;  %s16_s15 = sshll.u32 %s609_s14, 4  ;;  %s29_s13 = int_to_ptr.vmem [resolvable:$true] %s28_s13  ;;  %s638_s15 = int_to_ptr.vmem [resolvable:$true] %s16_s15 }
   0x4   :  { %s514_s18 = scalar_lea.hbm %s721_s1, 640 }
   0x5   :  { %p515_p0 = scmp.ne.s32.totalorder %s721_s1, %s514_s18  ;;  %p518_p1 = scmp.lt.u32.totalorder %s514_s18, %s721_s1 }
   0x7   :  { %p520_p2 = pnand %p518_p1, %p515_p0 }
   0x9   :  { %523 = shalt.err (!%p520_p2)
}
   0xa   :  { %s524_s23 = scalar_lea.vmem %s29_s13, 640  ;;  %p529_p4 = scmp.lt.s32.totalorder %s29_s13, %s29_s13 }
   0xb   :  { %p525_p3 = scmp.ne.s32.totalorder %s29_s13, %s524_s23  ;;  %p530_p5 = scmp.lt.s32.totalorder %s524_s23, %s524_s23 }
   0xd   :  { %p531_p6 = por %p530_p5, %p529_p4 }
   0xf   :  { %p532_p7 = pnand %p531_p6, %p525_p3 }
  0x11   :  { %535 = shalt.err (!%p532_p7)
}
  0x12   :  { %s610_s24 = smov 128   ;;  %s611_s25 = smov 8  }
  0x13   :  { %34 = dma.hbm_to_vmem [thread:$0]  %s721_s1, 640, %s29_s13, [#allocation6], %s610_s24, %s610_s24, %s611_s25  }
  0x14   :  { %s536_s30 = scalar_lea.hbm %s720_s0, 256 }
  0x15   :  { %p537_p8 = scmp.ne.s32.totalorder %s720_s0, %s536_s30  ;;  %p540_p9 = scmp.lt.u32.totalorder %s536_s30, %s720_s0 }
  0x17   :  { %p542_p10 = pnand %p540_p9, %p537_p8 }
  0x19   :  { %545 = shalt.err (!%p542_p10)
}
  0x1a   :  { %s546_s8 = scalar_lea.vmem %s638_s15, 256  ;;  %p551_p12 = scmp.lt.s32.totalorder %s638_s15, %s638_s15 }
  0x1b   :  { %p547_p11 = scmp.ne.s32.totalorder %s638_s15, %s546_s8  ;;  %p552_p13 = scmp.lt.s32.totalorder %s546_s8, %s546_s8 }
  0x1d   :  { %p553_p0 = por %p552_p13, %p551_p12 }
  0x1f   :  { %p554_p1 = pnand %p553_p0, %p547_p11 }
  0x21   :  { %557 = shalt.err (!%p554_p1)
}
  0x22   :  { %22 = dma.hbm_to_vmem [thread:$0]  %s720_s0, 256, %s638_s15, [#allocation3], %s610_s24, %s610_s24, %s611_s25  }
  0x23   :  { %s612_s10 = smov [#allocation7]   ;;  %s558_s14 = scalar_lea.hbm %s722_s2, 2048 }
  0x24   :  { %s40_s11 = sshll.u32 %s612_s10, 4  ;;  %p559_p2 = scmp.ne.s32.totalorder %s722_s2, %s558_s14  ;;  %s41_s11 = int_to_ptr.vmem [resolvable:$true] %s40_s11 }
  0x25   :  { %p562_p3 = scmp.lt.u32.totalorder %s558_s14, %s722_s2 }
  0x27   :  { %p564_p4 = pnand %p562_p3, %p559_p2 }
  0x29   :  { %567 = shalt.err (!%p564_p4)
}
  0x2a   :  { %s568_s20 = scalar_lea.vmem %s41_s11, 2048  ;;  %p573_p6 = scmp.lt.s32.totalorder %s41_s11, %s41_s11 }
  0x2b   :  { %p569_p5 = scmp.ne.s32.totalorder %s41_s11, %s568_s20  ;;  %p574_p7 = scmp.lt.s32.totalorder %s568_s20, %s568_s20 }
  0x2d   :  { %p575_p8 = por %p574_p7, %p573_p6 }
  0x2f   :  { %p576_p9 = pnand %p575_p8, %p569_p5 }
  0x31   :  { %579 = shalt.err (!%p576_p9)
}
  0x32   :  { %s613_s0 = smov 64   ;;  %s614_s15 = smov 4  }
  0x33   :  { %46 = dma.hbm_to_vmem [thread:$0]  %s722_s2, 2048, %s41_s11, [#allocation6], %s613_s0, %s613_s0, %s614_s15  }
  0x34   :  { %602 = dma.done.wait [#allocation3], 256  }
  0x35   :  { %603 = vsyncadd [#allocation3], 4294967040 }
  0x36   :  { %604 = dma.done.wait [#allocation6], 2688  }
  0x37   :  { %605 = vsyncadd [#allocation6], 4294964608  ;;  %v615_v0 = vmov 0.0   ;;  %vm100_vm0 = vcmask 130048   ;;  %v59_v1 = vld [vmem:[#allocation5] sm:$0xff]  ;;  %v60_v2 = vld [vmem:[#allocation5 + $0x8] sm:$0xff] }
  0x38   :  { %444 = vmatprep.subr.bf16.mxu1 %v615_v0  ;;  %v57_v3 = vld [vmem:[#allocation2] sm:$0xff]  ;;  %v484_v4 = vpack.c.bf16 %v60_v2, %v59_v1  ;;  %v498_v5 = vld [vmem:[#allocation7] sm:$0xff]   ;;  %v58_v6 = vld [vmem:[#allocation2 + $0x8] sm:$0xff]  ;;  %vm616_vm1 = vmmov 0   ;;  %s617_s2 = smov [#allocation8]  }
  0x39   :  { %441 = vmatprep.mubr.msk.f32.mxu0 %vm100_vm0, %v57_v3  ;;  %445 = vmatpush3.bf16.msra.mxu1 %v498_v5  ;;  %v499_v7 = vld [vmem:[#allocation7 + $0x8] sm:$0xff]   ;;  %v500_v8 = vld [vmem:[#allocation7 + $0x10] sm:$0xff]   ;;  %v501_v9 = vld [vmem:[#allocation7 + $0x18] sm:$0xff]   ;;  %s381_s23 = sshll.u32 %s617_s2, 4  ;;  %s382_s23 = int_to_ptr.vmem [resolvable:$true] %s381_s23 }
  0x3a   :  { %485 = vmatprep.subr.bf16.mxu0 %v484_v4  ;;  %446 = vmatprep.subr.bf16.mxu1 %v615_v0  ;;  %v502_v10 = vld [vmem:[#allocation7 + $0x20] sm:$0xff]   ;;  %v503_v11 = vld [vmem:[#allocation7 + $0x28] sm:$0xff]   ;;  %v504_v12 = vld [vmem:[#allocation7 + $0x30] sm:$0xff]   ;;  %s580_s26 = scalar_lea.vmem %s382_s23, 256  ;;  %p585_p11 = scmp.lt.s32.totalorder %s382_s23, %s382_s23 }
  0x3b   :  { %487 = vmatpush3.bf16.msra.mxu0 %v484_v4  ;;  %v505_v13 = vld [vmem:[#allocation7 + $0x38] sm:$0xff]   ;;  %460 = vmatprep.mubr.msk.bf16.mxu1 %vm616_vm1, %v615_v0  ;;  %v506_v14 = vld [vmem:[#allocation7 + $0x40] sm:$0xff]   ;;  %v507_v15 = vld [vmem:[#allocation7 + $0x48] sm:$0xff]   ;;  %p581_p10 = scmp.ne.s32.totalorder %s382_s23, %s580_s26  ;;  %p586_p12 = scmp.lt.s32.totalorder %s580_s26, %s580_s26 }
  0x3c   :  { %464 = vmatprep.subr.bf16.mxu0 %v615_v0  ;;  %v508_v16 = vld [vmem:[#allocation7 + $0x50] sm:$0xff]   ;;  %v509_v17 = vld [vmem:[#allocation7 + $0x58] sm:$0xff]   ;;  %v510_v18 = vld [vmem:[#allocation7 + $0x60] sm:$0xff]  }
  0x3d   :  { %447 = vmatpush3.bf16.msra.mxu1 %v499_v7  ;;  %v511_v19 = vld [vmem:[#allocation7 + $0x68] sm:$0xff]   ;;  %v512_v28 = vld [vmem:[#allocation7 + $0x70] sm:$0xff]   ;;  %v513_v29 = vld [vmem:[#allocation7 + $0x78] sm:$0xff]   ;;  %p587_p13 = por %p586_p12, %p585_p11 }
  0x3e   :  { %442 = vmatmul.mubr.msk.f32.vlgmr.msra.gmra.mrb[0].mxu0 %vm100_vm0, %v58_v6  ;;  %448 = vmatprep.subr.bf16.mxu1 %v615_v0  ;;  %v394_v20 = vld [vmem:[#allocation5 + $0x10] ss:$0 sm:$0xff]  ;;  %v397_v30 = vld [vmem:[#allocation5 + $0x18] ss:$0 sm:$0xff]  ;;  %v406_v40 = vld [vmem:[#allocation5 + $0x20] ss:$0 sm:$0xff] }
  0x3f   :  { %480 = vmatprep.mubr.msk.bf16.mxu0 %vm616_vm1, %v615_v0  ;;  %465 = vmatpush3.bf16.msra.mxu0 %v506_v14  ;;  %p588_p0 = pnand %p587_p13, %p581_p10 }
  0x40   :  { %466 = vmatprep.subr.bf16.mxu0 %v615_v0 }
  0x41   :  { %449 = vmatpush3.bf16.msra.mxu1 %v500_v8 }
  0x42   :  { %450 = vmatprep.subr.bf16.mxu1 %v615_v0 }
  0x43   :  { %467 = vmatpush3.bf16.msra.mxu0 %v507_v15 }
  0x44   :  { %468 = vmatprep.subr.bf16.mxu0 %v615_v0 }
  0x45   :  { %451 = vmatpush3.bf16.msra.mxu1 %v501_v9 }
  0x46   :  { %452 = vmatprep.subr.bf16.mxu1 %v615_v0 }
  0x47   :  { %469 = vmatpush3.bf16.msra.mxu0 %v508_v16 }
  0x48   :  { %470 = vmatprep.subr.bf16.mxu0 %v615_v0 }
  0x49   :  { %453 = vmatpush3.bf16.msra.mxu1 %v502_v10 }
  0x4a   :  { %454 = vmatprep.subr.bf16.mxu1 %v615_v0 }
  0x4b   :  { %471 = vmatpush3.bf16.msra.mxu0 %v509_v17 }
  0x4c   :  { %472 = vmatprep.subr.bf16.mxu0 %v615_v0 }
  0x4d   :  { %455 = vmatpush3.bf16.msra.mxu1 %v503_v11 }
  0x4e   :  { %456 = vmatprep.subr.bf16.mxu1 %v615_v0 }
  0x4f   :  { %473 = vmatpush3.bf16.msra.mxu0 %v510_v18 }
  0x50   :  { %474 = vmatprep.subr.bf16.mxu0 %v615_v0 }
  0x51   :  { %457 = vmatpush3.bf16.msra.mxu1 %v504_v12 }
  0x52   :  { %458 = vmatprep.subr.bf16.mxu1 %v615_v0 }
  0x53   :  { %475 = vmatpush3.bf16.msra.mxu0 %v511_v19 }
  0x54   :  { %476 = vmatprep.subr.bf16.mxu0 %v615_v0 }
  0x55   :  { %459 = vmatpush3.bf16.msra.mxu1 %v505_v13 }
  0x57   :  { %477 = vmatpush3.bf16.msra.mxu0 %v512_v28 }
  0x58   :  { %478 = vmatprep.subr.bf16.mxu0 %v615_v0 }
  0x5b   :  { %479 = vmatpush3.bf16.msra.mxu0 %v513_v29 }
 0x111   :  { %v443_v21 = vpop.f32.mrb[0].mxu0 }
 0x112   :  { %v179_v22 = vadd.f32 %v443_v21, %v394_v20  ;;  %v173_v23 = vpop.f32.mrb[1].mxu0 }
 0x113   :  { %v174_v24 = vadd.f32 %v394_v20, %v173_v23 }
 0x114   :  { %v183_v25 = vmax.f32 %v179_v22, 0.0 }
 0x115   :  { %v182_v26 = vmax.f32 %v174_v24, 0.0 }
 0x117   :  { %v184_v27 = vpack.c.bf16 %v183_v25, %v182_v26 }
 0x119   :  { %461 = vmatmul.mubr.bf16.vlgmr.msra.gmra.mrb[0].mxu1 %v184_v27 }
 0x1ec   :  { %v271_v31 = vpop.f32.mrb[0].mxu1 }
 0x1ed   :  { %v272_v32 = vadd.f32 %v397_v30, %v271_v31  ;;  %v462_v33 = vpop.f32.mrb[1].mxu1 }
 0x1ee   :  { %v274_v34 = vpop.f32.mrb[2].mxu1 }
 0x1ef   :  { %v275_v35 = vadd.f32 %v397_v30, %v274_v34  ;;  %v463_v36 = vpop.f32.mrb[3].mxu1  ;;  %v278_v37 = vmax.f32 %v272_v32, 0.0 }
 0x1f1   :  { %v279_v38 = vmax.f32 %v275_v35, 0.0 }
 0x1f3   :  { %v280_v39 = vpack.c.bf16 %v279_v38, %v278_v37 }
 0x1f5   :  { %481 = vmatmul.mubr.bf16.vlgmr.msra.gmra.mrb[4].mxu0 %v280_v39 }
 0x2c8   :  { %v367_v41 = vpop.f32.mrb[4].mxu0 }
 0x2c9   :  { %v368_v42 = vadd.f32 %v406_v40, %v367_v41  ;;  %v482_v43 = vpop.f32.mrb[5].mxu0 }
 0x2ca   :  { %v370_v44 = vpop.f32.mrb[6].mxu0 }
 0x2cb   :  { %374 = vst [vmem:[#allocation8] sm:$0xff] %v368_v42  ;;  %v371_v45 = vadd.f32 %v406_v40, %v370_v44  ;;  %v483_v46 = vpop.f32.mrb[7].mxu0 }
 0x2cd   :  { %375 = vst [vmem:[#allocation8 + $0x8] sm:$0xff] %v371_v45 }
 0x2ce   :  { %591 = shalt.err (!%p588_p0)
}
 0x2cf   :  { %s592_s29 = scalar_lea.hbm %s723_s3, 256 }
 0x2d0   :  { %p593_p1 = scmp.ne.s32.totalorder %s723_s3, %s592_s29  ;;  %p596_p2 = scmp.lt.u32.totalorder %s592_s29, %s723_s3 }
 0x2d2   :  { %p598_p3 = pnand %p596_p2, %p593_p1 }
 0x2d4   :  { %601 = shalt.err (!%p598_p3)
}
 0x2d5   :  { %387 = dma.vmem_to_hbm [thread:$0]  %s382_s23, 256, %s723_s3, [#allocation4], %s610_s24, %s610_s24, %s611_s25  }
 0x2d6   :  { %606 = dma.done.wait [#allocation4], 256  }
 0x2d7   :  { %607 = vsyncadd [#allocation4], 4294967040 }
 0x2d8   :  { %391 = vsyncpa [#allocation3], 1 }
 0x2d9   :  { %392 = vsyncpa [#allocation6], 1 }
 0x2da   :  { %393 = vsyncpa [#allocation4], 1 }

</bundles_post_ra>
